<compile_context>
chip_gen: v7x
topology: tpu7x:2x2x1
jax: 0.10.0
libtpu: 0.0.40
codegen_flags: <defaults>
</compile_context>

<pallas_src>
import math

import jax
import jax.numpy as jnp
import numpy as np
from jax import lax
from jax.experimental import pallas as pl
from jax.experimental.pallas import tpu as pltpu


def _round_up(x, m):
    return ((x + m - 1) // m) * m


def _vmem_budget_bytes():
    """85% of the detected VMEM capacity; conservative 64 MiB (v7x/TC) fallback."""
    cap = 64 * 1024 * 1024
    try:
        info = pltpu.get_tpu_info()
        detected = int(getattr(info, "vmem_capacity_bytes", 0))
        if detected > 0:
            cap = detected
    except Exception:
        pass  # no TPU visible at trace time (e.g. interpret mode) -> keep fallback
    return int(cap * 0.85)


# ----------------------------------------------------------------------------- kernels

def _make_seq_kernel(scale, need_mask, return_attn, use_bf16_matmul, approx_recip):
    """grid=(batch, tgt_tile). Refs: lens SMEM[B], q (tT,Dp), k (Sp,Dp), c (tT,Dp)[, a (tT,Sp)]."""

    def kernel(lens_ref, q_ref, k_ref, *out_refs):
        # Fold 1/sqrt(dim) into q: tT*Dp multiplies instead of tT*Sp on the scores.
        q = q_ref[...] * jnp.float32(scale)
        k = k_ref[...]
        if use_bf16_matmul:
            q_mm = q.astype(jnp.bfloat16)
            k_mm = k.astype(jnp.bfloat16)
        else:
            q_mm, k_mm = q, k

        # scores[t, s] = <q_t, k_s>: contract the shared last dim, no k^T copy.
        scores = lax.dot_general(
            q_mm, k_mm, dimension_numbers=(((1,), (1,)), ((), ())),
            preferred_element_type=jnp.float32)            # (tT, Sp) f32

        if need_mask:
            # sequence_mask(memory_lengths): positions >= length -> -inf.
            # (Also masks the padded src columns, since length <= S <= Sp.)
            src_len = lens_ref[pl.program_id(0)]
            src_pos = lax.broadcasted_iota(jnp.int32, scores.shape, 1)
            scores = jnp.where(src_pos < src_len, scores, -jnp.inf)

        # Numerically stable softmax over the src axis.
        m = jnp.max(scores, axis=-1, keepdims=True)
        e = jnp.exp(scores - m)
        denom = jnp.sum(e, axis=-1, keepdims=True)
        if approx_recip:
            p = e * pl.reciprocal(denom, approx=True)      # EUP; ~2^-9 rel error
        else:
            p = e / denom                                  # exact -> matches reference

        # c = attn @ memory_bank
        c = lax.dot_general(
            p.astype(k_mm.dtype), k_mm, dimension_numbers=(((1,), (0,)), ((), ())),
            preferred_element_type=jnp.float32)            # (tT, Dp)

        out_refs[0][...] = c.astype(out_refs[0].dtype)
        if return_attn:
            out_refs[1][...] = p.astype(out_refs[1].dtype)

    return kernel


def _make_decode_kernel(scale, need_mask, return_attn, use_bf16_matmul, approx_recip):
    """grid=(batch tiles,). Refs: lens (tB,1,1), q (tB,1,Dp), k (tB,Sp,Dp), c (tB,1,Dp)[, a (tB,1,Sp)]."""

    def kernel(lens_ref, q_ref, k_ref, *out_refs):
        q = q_ref[...] * jnp.float32(scale)                # (tB, 1, Dp) f32
        k = k_ref[...]                                     # (tB, Sp, Dp) f32
        if use_bf16_matmul:
            q_mm = q.astype(jnp.bfloat16)
            k_mm = k.astype(jnp.bfloat16)
        else:
            q_mm, k_mm = q, k

        scores = jnp.einsum("bqd,bsd->bqs", q_mm, k_mm,
                            preferred_element_type=jnp.float32)   # (tB, 1, Sp)

        if need_mask:
            lens = lens_ref[...]                           # (tB, 1, 1) int32, per-row
            src_pos = lax.broadcasted_iota(jnp.int32, scores.shape, 2)
            scores = jnp.where(src_pos < lens, scores, -jnp.inf)

        m = jnp.max(scores, axis=-1, keepdims=True)
        e = jnp.exp(scores - m)
        denom = jnp.sum(e, axis=-1, keepdims=True)
        if approx_recip:
            p = e * pl.reciprocal(denom, approx=True)
        else:
            p = e / denom

        c = jnp.einsum("bqs,bsd->bqd", p.astype(k_mm.dtype), k_mm,
                       preferred_element_type=jnp.float32)        # (tB, 1, Dp)

        out_refs[0][...] = c.astype(out_refs[0].dtype)
        if return_attn:
            out_refs[1][...] = p.astype(out_refs[1].dtype)

    return kernel


# ----------------------------------------------------------------------------- drivers

def _attend_seq(inp3, memory_bank, memory_lengths, *, return_attn, use_bf16_matmul,
                attn_dtype, approx_recip, tgt_tile, single_buffer_k, budget):
    """Multi-step path: grid=(B, nT), (Sp, Dp) memory bank resident across T tiles."""
    B, T, D = inp3.shape
    S = memory_bank.shape[1]
    Dp = _round_up(D, 128)
    Sp = _round_up(S, 128)

    need_mask = (memory_lengths is not None) or (Sp != S)
    lens = (memory_lengths if memory_lengths is not None
            else jnp.full((B,), S, dtype=jnp.int32)).astype(jnp.int32)

    attn_itemsize = jnp.dtype(attn_dtype).itemsize
    k_bufs = 1 if single_buffer_k else 2

    def footprint(tt):
        fp = 2 * tt * Dp * 4                       # q blocks (double-buffered)
        fp += k_bufs * Sp * Dp * 4                 # resident memory-bank block(s)
        fp += 2 * tt * Dp * 4                      # c output blocks
        if return_attn:
            fp += 2 * tt * Sp * attn_itemsize      # attn output blocks
        fp += 3 * tt * Sp * 4                      # scores / exp / p temporaries
        return fp

    tT = min(_round_up(T, 8), _round_up(max(int(tgt_tile), 8), 8))
    while tT > 8 and footprint(tT) > budget:
        tT = max(8, _round_up(tT // 2, 8))
    # TODO(synk): if footprint(8) still exceeds the budget (very long sources on v7x's
    # 64 MiB/TC), switch to an S-tiled online-softmax inner loop instead of keeping the
    # full (Sp, Dp) memory bank resident.
    vmem_limit = int(min(budget, max(32 * 1024 * 1024, int(footprint(tT) * 1.25))))

    Tp = _round_up(T, tT)
    nT = Tp // tT

    q = inp3.astype(jnp.float32)
    k = memory_bank.astype(jnp.float32)
    if (Tp, Dp) != (T, D):
        q = jnp.pad(q, ((0, 0), (0, Tp - T), (0, Dp - D)))
    if (Sp, Dp) != (S, D):
        k = jnp.pad(k, ((0, 0), (0, Sp - S), (0, Dp - D)))

    k_spec_kwargs = {}
    if single_buffer_k:
        # K's block index is constant across the inner T axis -> a single buffer halves
        # the dominant VMEM term; the one exposed DMA per batch amortizes over nT tiles.
        k_spec_kwargs["pipeline_mode"] = pl.Buffered(1)

    out_shapes = [jax.ShapeDtypeStruct((B, Tp, Dp), jnp.float32)]
    out_specs = [pl.BlockSpec((None, tT, Dp), lambda b, t, lens_ref: (b, t, 0))]
    if return_attn:
        out_shapes.append(jax.ShapeDtypeStruct((B, Tp, Sp), attn_dtype))
        out_specs.append(pl.BlockSpec((None, tT, Sp), lambda b, t, lens_ref: (b, t, 0)))

    grid_spec = pltpu.PrefetchScalarGridSpec(
        num_scalar_prefetch=1,                     # memory_lengths -> SMEM
        grid=(B, nT),
        in_specs=[
            pl.BlockSpec((None, tT, Dp), lambda b, t, lens_ref: (b, t, 0)),
            # K block index independent of t -> stays resident in VMEM (no re-DMA).
            pl.BlockSpec((None, Sp, Dp), lambda b, t, lens_ref: (b, 0, 0),
                         **k_spec_kwargs),
        ],
        out_specs=out_specs,
    )

    cost = pl.CostEstimate(
        flops=4 * B * Tp * Sp * Dp,
        transcendentals=B * Tp * Sp,
        bytes_accessed=4 * B * (2 * Tp * Dp + Sp * Dp)
        + (attn_itemsize * B * Tp * Sp if return_attn else 0))

    kernel = _make_seq_kernel(1.0 / math.sqrt(D), need_mask, return_attn,
                              use_bf16_matmul, approx_recip)

    outs = pl.pallas_call(
        kernel,
        grid_spec=grid_spec,
        out_shape=tuple(out_shapes),
        compiler_params=pltpu.CompilerParams(
            dimension_semantics=("parallel", "parallel"),
            vmem_limit_bytes=vmem_limit),
        cost_estimate=cost,
    )(lens, q, k)

    if return_attn:
        c_bm, attn_bm = outs
        return c_bm[:, :T, :D], attn_bm[:, :T, :S]
    c_bm = outs[0] if isinstance(outs, (tuple, list)) else outs
    return c_bm[:, :T, :D], None


def _attend_decode(inp2, memory_bank, memory_lengths, *, return_attn, use_bf16_matmul,
                   attn_dtype, approx_recip, tB, vmem_limit):
    """One-step path: batch rows packed on the sublane axis, grid over batch tiles."""
    B, D = inp2.shape
    S = memory_bank.shape[1]
    Dp = _round_up(D, 128)
    Sp = _round_up(S, 128)
    Bp = _round_up(B, tB)
    nB = Bp // tB

    need_mask = (memory_lengths is not None) or (Sp != S)
    lens = (memory_lengths if memory_lengths is not None
            else jnp.full((B,), S, dtype=jnp.int32)).astype(jnp.int32)
    lens3 = lens.reshape(B, 1, 1)
    if Bp != B:
        # Pad with 1 (not 0) so padded rows stay finite (their output is discarded).
        lens3 = jnp.pad(lens3, ((0, Bp - B), (0, 0), (0, 0)), constant_values=1)

    attn_itemsize = jnp.dtype(attn_dtype).itemsize

    q = inp2.astype(jnp.float32)[:, None, :]               # (B, 1, D)
    k = memory_bank.astype(jnp.float32)
    if (Bp, Dp) != (B, D):
        q = jnp.pad(q, ((0, Bp - B), (0, 0), (0, Dp - D)))
    if (Bp, Sp, Dp) != (B, S, D):
        k = jnp.pad(k, ((0, Bp - B), (0, Sp - S), (0, Dp - D)))

    out_shapes = [jax.ShapeDtypeStruct((Bp, 1, Dp), jnp.float32)]
    out_specs = [pl.BlockSpec((tB, 1, Dp), lambda i: (i, 0, 0))]
    if return_attn:
        out_shapes.append(jax.ShapeDtypeStruct((Bp, 1, Sp), attn_dtype))
        out_specs.append(pl.BlockSpec((tB, 1, Sp), lambda i: (i, 0, 0)))

    grid_spec = pltpu.PrefetchScalarGridSpec(
        num_scalar_prefetch=0,
        grid=(nB,),
        in_specs=[
            pl.BlockSpec((tB, 1, 1), lambda i: (i, 0, 0)),     # per-row lengths
            pl.BlockSpec((tB, 1, Dp), lambda i: (i, 0, 0)),    # queries
            pl.BlockSpec((tB, Sp, Dp), lambda i: (i, 0, 0)),   # memory bank (per row)
        ],
        out_specs=out_specs,
    )

    cost = pl.CostEstimate(
        flops=4 * Bp * Sp * Dp,
        transcendentals=Bp * Sp,
        bytes_accessed=4 * Bp * (2 * Dp + Sp * Dp)
        + (attn_itemsize * Bp * Sp if return_attn else 0))

    kernel = _make_decode_kernel(1.0 / math.sqrt(D), need_mask, return_attn,
                                 use_bf16_matmul, approx_recip)

    outs = pl.pallas_call(
        kernel,
        grid_spec=grid_spec,
        out_shape=tuple(out_shapes),
        compiler_params=pltpu.CompilerParams(
            dimension_semantics=("parallel",),
            vmem_limit_bytes=vmem_limit),
        cost_estimate=cost,
    )(lens3, q, k)

    if return_attn:
        c_b, attn_b = outs
        return c_b[:B, 0, :D], attn_b[:B, 0, :S]
    c_b = outs[0] if isinstance(outs, (tuple, list)) else outs
    return c_b[:B, 0, :D], None


# ----------------------------------------------------------------------------- public

def dot_attention(inp, memory_bank, memory_lengths=None, coverage=None, *,
                  return_attn=True, time_major=True,
                  use_bf16_matmul=True, attn_dtype=jnp.float32,
                  approx_softmax_recip=False, single_buffer_k=False,
                  tgt_tile=256, decode_batch_tile=64):
    """Pallas DotAttention forward.

    Args:
      inp:              f32 [batch, tgt_len, dim] or [batch, dim] (one-step decode).
      memory_bank:      f32 [batch, src_len, dim].
      memory_lengths:   int32 [batch] or None.
      return_attn:      if False, skip the [B,T,S] attention writeback entirely.
      time_major:       if True (default) return the PyTorch [tgt_len, batch, ...]
                        layout; if False stay batch-major (skips the XLA transpose).
      use_bf16_matmul:  (default True) bf16 MXU operands, f32 accumulation/softmax;
                        set False for strict f32 parity with the reference.
      attn_dtype:       dtype of the returned attention (bf16 halves the writeback).
      approx_softmax_recip: EUP approximate reciprocal for the softmax denominator
                        (~2^-9 relative error); default False = exact divide.
      single_buffer_k:  request a single VMEM buffer for the resident memory-bank
                        block (pl.Buffered(1)) — helps v7x's 64 MiB/TC for long src.
      tgt_tile:         max tgt-len tile (rounded to a multiple of 8).
      decode_batch_tile: max batch tile for the one-step decode kernel.

    Returns:
      (c, attn) — attn is None when return_attn=False.
    """
    # TODO(synk): the coverage term is not supported (the reference module does not
    # implement it either).
    del coverage

    one_step = inp.ndim == 2
    if one_step:
        B, D = inp.shape
    else:
        B, T, D = inp.shape
    Bk, S, Dk = memory_bank.shape
    assert B == Bk and D == Dk, "batch/dim mismatch between query and memory_bank"
    if memory_lengths is not None:
        memory_lengths = memory_lengths.astype(jnp.int32)

    budget = _vmem_budget_bytes()
    Dp = _round_up(D, 128)
    Sp = _round_up(S, 128)
    attn_itemsize = jnp.dtype(attn_dtype).itemsize

    if one_step:
        # Batch-tiled decode kernel: fills sublanes with real batch rows and amortizes
        # the per-grid-step overhead instead of padding each query row to 8.
        def dec_footprint(tb):
            fp = 2 * tb * Dp * 4                   # q blocks
            fp += 2 * tb * Sp * Dp * 4             # batch-tiled K blocks (dominant)
            fp += 2 * tb * Dp * 4                  # c output blocks
            if return_attn:
                fp += 2 * tb * Sp * attn_itemsize
            fp += 3 * tb * Sp * 4                  # scores / exp / p temporaries
            return fp

        tB = min(_round_up(max(int(decode_batch_tile), 8), 8), _round_up(B, 8))
        while tB > 8 and dec_footprint(tB) > budget:
            tB = max(8, _round_up(tB // 2, 8))

        if dec_footprint(tB) <= budget:
            vmem_limit = int(min(budget, max(32 * 1024 * 1024,
                                             int(dec_footprint(tB) * 1.25))))
            return _attend_decode(
                inp, memory_bank, memory_lengths, return_attn=return_attn,
                use_bf16_matmul=use_bf16_matmul, attn_dtype=attn_dtype,
                approx_recip=approx_softmax_recip, tB=tB, vmem_limit=vmem_limit)
        # Memory bank too large to batch-tile: fall back to the per-batch seq kernel.
        inp3 = inp[:, None, :]
    else:
        inp3 = inp

    c_bm, attn_bm = _attend_seq(
        inp3, memory_bank, memory_lengths,
        return_attn=return_attn, use_bf16_matmul=use_bf16_matmul,
        attn_dtype=attn_dtype, approx_recip=approx_softmax_recip,
        tgt_tile=tgt_tile, single_buffer_k=single_buffer_k, budget=budget)

    if one_step:
        c = c_bm[:, 0, :]                                    # [B, D]
        attn = attn_bm[:, 0, :] if return_attn else None     # [B, S]
    elif time_major:
        c = jnp.transpose(c_bm, (1, 0, 2))                   # [T, B, D]
        attn = jnp.transpose(attn_bm, (1, 0, 2)) if return_attn else None
    else:
        c, attn = c_bm, attn_bm                              # batch-major, no transpose
    return c, attn


def _reference(inp, memory_bank, memory_lengths):
    """Pure-JAX reference matching the PyTorch forward (multi-step path, exact f32)."""
    D = inp.shape[-1]
    S = memory_bank.shape[1]
    scores = jnp.einsum("btd,bsd->bts", inp, memory_bank,
                        precision=lax.Precision.HIGHEST)
    mask = jnp.arange(S)[None, None, :] < memory_lengths[:, None, None]
    scores = jnp.where(mask, scores, -jnp.inf)
    p = jax.nn.softmax(scores / jnp.sqrt(jnp.float32(D)), axis=-1)
    c = jnp.einsum("bts,bsd->btd", p, memory_bank, precision=lax.Precision.HIGHEST)
    return jnp.transpose(c, (1, 0, 2)), jnp.transpose(p, (1, 0, 2))


if __name__ == "__main__":
    # DotAttention has no learned parameters (dim only) — nothing to initialize.
    B, T, S, D = 2, 8, 16, 32

    key = jax.random.PRNGKey(0)
    k_q, k_m = jax.random.split(key)
    query = jax.random.normal(k_q, (B, T, D), dtype=jnp.float32)
    memory_bank = jax.random.normal(k_m, (B, S, D), dtype=jnp.float32)
    memory_lengths = jnp.array([S, 11], dtype=jnp.int32)

    c_ref, attn_ref = _reference(query, memory_bank, memory_lengths)

    # 1) Strict f32 path (exact softmax divide) — tight parity with the reference.
    c, attn = dot_attention(query, memory_bank, memory_lengths, use_bf16_matmul=False)
    jax.block_until_ready((c, attn))
    assert c.shape == (T, B, D) and attn.shape == (T, B, S)
    np.testing.assert_allclose(np.asarray(attn), np.asarray(attn_ref), rtol=1e-4, atol=1e-4)
    np.testing.assert_allclose(np.asarray(c), np.asarray(c_ref), rtol=1e-4, atol=1e-4)

    # 2) Default fast path (bf16 MXU operands, f32 accumulation/softmax).
    c_fast, attn_fast = dot_attention(query, memory_bank, memory_lengths)
    jax.block_until_ready((c_fast, attn_fast))
    np.testing.assert_allclose(np.asarray(attn_fast), np.asarray(attn_ref), rtol=3e-2, atol=3e-2)
    np.testing.assert_allclose(np.asarray(c_fast), np.asarray(c_ref), rtol=3e-2, atol=3e-2)

    # 3) Context-only, batch-major (skips the attn writeback and the time-major transpose).
    c2, attn2 = dot_attention(query, memory_bank, return_attn=False, time_major=False,
                              use_bf16_matmul=False)
    jax.block_until_ready(c2)
    assert attn2 is None
    c2_ref, _ = _reference(query, memory_bank, jnp.full((B,), S, jnp.int32))
    np.testing.assert_allclose(np.asarray(c2),
                               np.asarray(jnp.transpose(c2_ref, (1, 0, 2))),
                               rtol=1e-4, atol=1e-4)

    # 4) One-step (decode) path: batch-tiled kernel, matches the t=0 slice of the ref.
    q1 = query[:, 0, :]
    c1, attn1 = dot_attention(q1, memory_bank, memory_lengths, use_bf16_matmul=False)
    jax.block_until_ready((c1, attn1))
    assert c1.shape == (B, D) and attn1.shape == (B, S)
    np.testing.assert_allclose(np.asarray(attn1), np.asarray(attn_ref[0]), rtol=1e-4, atol=1e-4)
    np.testing.assert_allclose(np.asarray(c1), np.asarray(c_ref[0]), rtol=1e-4, atol=1e-4)

    print("KERNEL_OK")
</pallas_src>

<mosaic_0001>
module attributes {stable_mosaic.version = 11 : i64} {
  func.func @kernel(%arg0: i32, %arg1: i32, %arg2: memref<2xi32, #tpu.memory_space<smem>>, %arg3: memref<1x8x128xf32, #tpu.memory_space<vmem>>, %arg4: memref<1x128x128xf32, #tpu.memory_space<vmem>>, %arg5: memref<1x8x128xf32, #tpu.memory_space<vmem>>, %arg6: memref<1x8x128xf32, #tpu.memory_space<vmem>>) attributes {dimension_semantics = [#tpu.dimension_semantics<parallel>, #tpu.dimension_semantics<parallel>], iteration_bounds = array<i64: 2, 1>, scalar_prefetch = 1 : i64, scratch_operands = 0 : i64, tpu.core_type = #tpu.core_type<tc>, window_params = [{transform_indices = @transform_0, window_bounds = array<i64: 1, 8, 128>}, {transform_indices = @transform_1, window_bounds = array<i64: 1, 128, 128>}, {transform_indices = @transform_2, window_bounds = array<i64: 1, 8, 128>}, {transform_indices = @transform_3, window_bounds = array<i64: 1, 8, 128>}]} {
    %c0 = arith.constant 0 : index
    %c0_0 = arith.constant 0 : index
    %c0_1 = arith.constant 0 : index
    %0 = vector.load %arg3[%c0, %c0_0, %c0_1] : memref<1x8x128xf32, #tpu.memory_space<vmem>>, vector<1x8x128xf32>
    %1 = vector.shape_cast %0 : vector<1x8x128xf32> to vector<8x128xf32>
    %cst = arith.constant 0.176776692 : f32
    %2 = vector.broadcast %cst : f32 to vector<8x128xf32>
    %3 = arith.mulf %1, %2 : vector<8x128xf32>
    %c0_2 = arith.constant 0 : index
    %c0_3 = arith.constant 0 : index
    %c0_4 = arith.constant 0 : index
    %4 = vector.load %arg4[%c0_2, %c0_3, %c0_4] : memref<1x128x128xf32, #tpu.memory_space<vmem>>, vector<1x128x128xf32>
    %5 = vector.shape_cast %4 : vector<1x128x128xf32> to vector<128x128xf32>
    %cst_5 = arith.constant dense<0.000000e+00> : vector<8x128xf32>
    %6 = tpu.matmul %3, %5, %cst_5 {dimension_numbers = #tpu.dot_dimension_numbers<[1], [1], [0], [0], [0, 0, 1, 0], [], []>} : vector<8x128xf32>, vector<128x128xf32>, vector<8x128xf32> -> vector<8x128xf32>
    %7 = arith.index_cast %arg0 : i32 to index
    %8 = memref.load %arg2[%7] : memref<2xi32, #tpu.memory_space<smem>>
    %9 = tpu.iota {dimensions = array<i32: 1>} : vector<8x128xi32>
    %10 = vector.broadcast %8 : i32 to vector<8x128xi32>
    %11 = arith.cmpi slt, %9, %10 : vector<8x128xi32>
    %cst_6 = arith.constant 0xFF800000 : f32
    %12 = vector.broadcast %cst_6 : f32 to vector<8x128xf32>
    %13 = arith.select %11, %6, %12 : vector<8x128xi1>, vector<8x128xf32>
    %cst_7 = arith.constant dense<0xFF800000> : vector<8xf32>
    %14 = vector.multi_reduction <maximumf>, %13, %cst_7 [1] : vector<8x128xf32> to vector<8xf32>
    %15 = vector.shape_cast %14 : vector<8xf32> to vector<8x1xf32>
    %16 = vector.broadcast %15 : vector<8x1xf32> to vector<8x128xf32>
    %17 = arith.subf %13, %16 : vector<8x128xf32>
    %18 = math.exp %17 : vector<8x128xf32>
    %cst_8 = arith.constant dense<0.000000e+00> : vector<8xf32>
    %19 = vector.multi_reduction <add>, %18, %cst_8 [1] : vector<8x128xf32> to vector<8xf32>
    %20 = vector.shape_cast %19 : vector<8xf32> to vector<8x1xf32>
    %21 = vector.broadcast %20 : vector<8x1xf32> to vector<8x128xf32>
    %22 = arith.divf %18, %21 : vector<8x128xf32>
    %cst_9 = arith.constant dense<0.000000e+00> : vector<8x128xf32>
    %23 = tpu.matmul %22, %5, %cst_9 {dimension_numbers = #tpu.dot_dimension_numbers<[1], [0], [0], [1], [0, 0, 1, 1], [], []>} : vector<8x128xf32>, vector<128x128xf32>, vector<8x128xf32> -> vector<8x128xf32>
    %c0_10 = arith.constant 0 : index
    %c0_11 = arith.constant 0 : index
    %c0_12 = arith.constant 0 : index
    %24 = vector.load %arg5[%c0_10, %c0_11, %c0_12] : memref<1x8x128xf32, #tpu.memory_space<vmem>>, vector<1x8x128xf32>
    %25 = vector.shape_cast %24 : vector<1x8x128xf32> to vector<8x128xf32>
    %26 = vector.shape_cast %23 : vector<8x128xf32> to vector<1x8x128xf32>
    tpu.vector_store %arg5[%c0_10, %c0_11, %c0_12], %26 {strides = array<i32>} : memref<1x8x128xf32, #tpu.memory_space<vmem>>, vector<1x8x128xf32>,
    %c0_13 = arith.constant 0 : index
    %c0_14 = arith.constant 0 : index
    %c0_15 = arith.constant 0 : index
    %27 = vector.load %arg6[%c0_13, %c0_14, %c0_15] : memref<1x8x128xf32, #tpu.memory_space<vmem>>, vector<1x8x128xf32>
    %28 = vector.shape_cast %27 : vector<1x8x128xf32> to vector<8x128xf32>
    %29 = vector.shape_cast %22 : vector<8x128xf32> to vector<1x8x128xf32>
    tpu.vector_store %arg6[%c0_13, %c0_14, %c0_15], %29 {strides = array<i32>} : memref<1x8x128xf32, #tpu.memory_space<vmem>>, vector<1x8x128xf32>,
    return
  }
  func.func @transform_0(%arg0: i32, %arg1: i32, %arg2: memref<2xi32, #tpu.memory_space<smem>>) -> (i32, i32, i32) {
    %c0_i32 = arith.constant 0 : i32
    %c0_i32_0 = arith.constant 0 : i32
    return %arg0, %arg1, %c0_i32 : i32, i32, i32
  }
  func.func @transform_1(%arg0: i32, %arg1: i32, %arg2: memref<2xi32, #tpu.memory_space<smem>>) -> (i32, i32, i32) {
    %c0_i32 = arith.constant 0 : i32
    %c0_i32_0 = arith.constant 0 : i32
    %c0_i32_1 = arith.constant 0 : i32
    return %arg0, %c0_i32, %c0_i32_0 : i32, i32, i32
  }
  func.func @transform_2(%arg0: i32, %arg1: i32, %arg2: memref<2xi32, #tpu.memory_space<smem>>) -> (i32, i32, i32) {
    %c0_i32 = arith.constant 0 : i32
    %c0_i32_0 = arith.constant 0 : i32
    return %arg0, %arg1, %c0_i32 : i32, i32, i32
  }
  func.func @transform_3(%arg0: i32, %arg1: i32, %arg2: memref<2xi32, #tpu.memory_space<smem>>) -> (i32, i32, i32) {
    %c0_i32 = arith.constant 0 : i32
    %c0_i32_0 = arith.constant 0 : i32
    return %arg0, %arg1, %c0_i32 : i32, i32, i32
  }
}

</mosaic_0001>

<bundles_post_ra>
// kernel: tpu_custom_call.1
= control target key start
LH: loop header
LB: loop body
LE: loop exit
PB: predicated region body
PF: predicated region fallthrough
CT: control target
= control target key end

     0   :  { %s1376_s0 = inlined_call_operand.hbm [shape: s32[2], index: 0, kind: input, shape index: {}]   ;;  %s1377_s1 = inlined_call_operand.hbm [shape: f32[2,8,128], index: 1, kind: input, shape index: {}]   ;;  %s1378_s2 = inlined_call_operand.hbm [shape: f32[2,128,128], index: 2, kind: input, shape index: {}]   ;;  %s1379_s3 = inlined_call_operand.hbm [shape: f32[2,8,128], index: 3, kind: output, shape index: {0}]   ;;  %s1380_s4 = inlined_call_operand.hbm [shape: f32[2,8,128], index: 4, kind: output, shape index: {1}]  }
   0x1   :  { %s861_s17 = scalar_lea.hbm %s1376_s0, 16 }
   0x2   :  { %p862_p0 = scmp.ne.s32.totalorder %s1376_s0, %s861_s17  ;;  %p865_p1 = scmp.lt.u32.totalorder %s861_s17, %s1376_s0 }
   0x4   :  { %p867_p2 = pnand %p865_p1, %p862_p0 }
   0x6   :  { %870 = shalt.err (!%p867_p2)  }
   0x7   :  { %s1053_s22 = smov [#allocation3]  }
   0x8   :  { %11 = dma.hbm_to_smem %s1376_s0, 16, %s1053_s22, [#allocation2] }
   0x9   :  { %1011 = dma.done.wait [#allocation2], 16 }
   0xa   :  { %1012 = vsyncadd [#allocation2], 4294967280 }
   0xb   :  { %13 = sfence }
   0xc   :  { %14 = vsyncpa [#allocation5], 0 }
   0xd   :  { %16 = vsyncpa [#allocation5 + $0x1], 0 }
   0xe   :  { %17 = vsyncpa [#allocation8], 0 }
   0xf   :  { %19 = vsyncpa [#allocation8 + $0x1], 0 }
  0x10   :  { %20 = vsyncpa [#allocation6], 0 }
  0x11   :  { %22 = vsyncpa [#allocation6 + $0x1], 0 }
  0x12   :  { %23 = vsyncpa [#allocation11], 0 }
  0x13   :  { %25 = vsyncpa [#allocation11 + $0x1], 0  ;;  %s1100_s25 = smov 0   ;;  %s1102_s26 = smov 0  }
  0x14   :  { %s1104_s27 = smov 0   ;;  %s1106_s28 = smov 0  }
  0x15   :  { %s1108_s0 = smov 0   ;;  %s1110_s29 = smov 0  }
  0x16 LB: > { %s606_s30 = sadd.s32 4294967295, %s1051_s29   ;;  %s607_s5 = sadd.s32 4294967294, %s1051_s29   ;;  %s1051_s29 = sphi %s1110_s29, %s31_s29   ;;  %s1047_s0 = sphi %s1108_s0, %s1399_s0   ;;  %s1043_s28 = sphi %s1106_s28, %s1398_s28   ;;  %s1039_s27 = sphi %s1104_s27, %s1397_s27   ;;  %s1035_s26 = sphi %s1102_s26, %s1396_s26   ;;  %s1031_s25 = sphi %s1100_s25, %s1395_s25  }
  0x17   : > { %s43_s6 = sadd.s32 1, %s1047_s0  ;;  %s52_s7 = sadd.s32 1, %s1039_s27 }
  0x18   : > { %p45_p3 = scmp.ge.s32.totalorder %s43_s6, 2  ;;  %p59_p4 = scmp.ne.s32.totalorder %s1039_s27, %s1035_s26 }
  0x19   : > { %p60_p5 = scmp.eq.s32.totalorder %s1051_s29, 0  ;;  %p65_p6 = scmp.ne.s32.totalorder %s1035_s26, %s1031_s25 }
  0x1a   : > { %s1401_s6 = smov (%p45_p3, %s43_s6), 0  ;;  %p66_p8 = scmp.eq.s32.totalorder %s606_s30, 0 }
  0x1b   : > { %p1141_p7 = por %p60_p5, %p59_p4  ;;  %s47_s9 = ssub.s32 %s1047_s0, %s1401_s6 }
  0x1c   : > { %p117_p9 = scmp.eq.s32.totalorder %s606_s30, 1  ;;  %p50_p10 = scmp.eq.s32.totalorder %s47_s9, 0 }
  0x1d   : > { %p1147_p11 = por %p66_p8, %p65_p6  ;;  %p123_p13 = scmp.eq.s32.totalorder %s607_s5, 1 }
  0x1e   : > { %p1151_p12 = por %p117_p9, %p59_p4  ;;  %p801_p2 = scmp.lt.s32.totalorder %s1051_s29, 2 }
  0x1f   : > { %s1384_s10 = scalar_select %p1147_p11, 1, 0 }
  0x20   : > { %s1385_s11 = scalar_select %p1151_p12, 1, 0 }
  0x21   : > { %s1156_s12 = scalar_select %p50_p10, %s1039_s27, %s52_s7  }
  0x22   : > { %p1158_p0 = por %p123_p13, %p65_p6  ;;  %s1165_s14 = sand.u32 1, %s1039_s27  }
  0x23   : > { %s610_s15 = sshll.u32 %s1165_s14, 3  ;;  %s611_s16 = sshll.u32 %s1047_s0, 7 }
  0x24   : > { %s1386_s13 = scalar_select %p1158_p0, 1, 0 }
  0x25   : > { %s1172_s19 = scalar_lea.hbm %s1377_s1, %s611_s16  ;;  %s175_s20 = scalar_lea.vmem [#allocation4], %s610_s15 }
  0x26   : > { %s183_s21 = sshll.u32 %s175_s20, 4  ;;  %p1178_p3 = pnand %p801_p2, %p1141_p7  ;;  %s1174_s21 = int_to_ptr.vmem [resolvable:$true] %s183_s21 }
  0x27   : > { %s172_s23 = scalar_lea.sflag [#allocation5], %s1165_s14  ;;  %s871_s24 = scalar_lea.hbm %s1172_s19, 128 }
  0x28   : > { %p872_p6 = scmp.ne.s32.totalorder %s1172_s19, %s871_s24  ;;  %p873_p8 = pneg %p1178_p3 }
  0x29   : > { %s876_s7 = scalar_lea.hbm %s1377_s1, 256  ;;  %p877_p7 = scmp.lt.u32.totalorder %s1172_s19, %s1377_s1 }
  0x2a   : > { %p874_p9 = pnand %p873_p8, %p872_p6  ;;  %p878_p13 = scmp.lt.u32.totalorder %s876_s7, %s871_s24 }
  0x2b   : > { %p880_p1 = scmp.lt.u32.totalorder %s871_s24, %s1172_s19 }
  0x2c   : > { %p875_p10 = pneg %p874_p9  ;;  %p879_p2 = por %p878_p13, %p877_p7 }
  0x2e   : > { %p881_p4 = por %p880_p1, %p879_p2 }
  0x30   : > { %p882_p5 = pnand %p881_p4, %p875_p10 }
  0x32   : > { %885 = shalt.err (!%p882_p5)
}
  0x33   : > { %s886_s15 = scalar_lea.vmem %s1174_s21, 128  ;;  %s1054_s16 = smov [#allocation4]  }
  0x34   : > { %p887_p6 = scmp.ne.s32.totalorder %s1174_s21, %s886_s15  ;;  %s891_s17 = sshll.u32 %s1054_s16, 4  ;;  %s892_s17 = int_to_ptr.vmem [resolvable:$false] %s891_s17 }
  0x35   : > { %s893_s18 = scalar_lea.vmem %s892_s17, 256  ;;  %p894_p12 = scmp.lt.s32.totalorder %s1174_s21, %s892_s17 }
  0x36   : > { %p889_p9 = pnand %p887_p6, %p873_p8  ;;  %p895_p7 = scmp.lt.s32.totalorder %s893_s18, %s886_s15 }
  0x38   : > { %p890_p0 = pneg %p889_p9  ;;  %p896_p13 = por %p895_p7, %p894_p12 }
  0x3a   : > { %p897_p1 = pnand %p896_p13, %p890_p0 }
  0x3c   : > { %900 = shalt.err (!%p897_p1)
}
  0x3d   : > { %790 = dma.hbm_to_vmem [thread:$0]  (!%p1178_p3), %s1172_s19, 128, %s1174_s21, %s172_s23  }
  0x3e   : > { %p1388_p4 = scmp.lt.s32.totalorder %s1051_s29, 3  ;;  %p1389_p5 = scmp.ge.s32.totalorder %s1051_s29, 1 }
  0x3f   : > { %s612_s24 = sshll.u32 %s1165_s14, 7  ;;  %s626_s30 = sshll.u32 %s1047_s0, 11 }
  0x40   : > { %p1214_p10 = pnand %p1389_p5, %p1388_p4  ;;  %s1223_s8 = scalar_lea.hbm %s1378_s2, %s626_s30 }
  0x41   : > { %s194_s9 = scalar_lea.vmem [#allocation7], %s612_s24  ;;  %s191_s19 = scalar_lea.sflag [#allocation8], %s1165_s14 }
  0x42   : > { %s201_s15 = sshll.u32 %s194_s9, 4  ;;  %s901_s21 = scalar_lea.hbm %s1223_s8, 2048  ;;  %s1225_s15 = int_to_ptr.vmem [resolvable:$true] %s201_s15 }
  0x43   : > { %p902_p12 = scmp.ne.s32.totalorder %s1223_s8, %s901_s21  ;;  %s906_s17 = scalar_lea.hbm %s1378_s2, 4096 }
  0x44   : > { %p907_p6 = scmp.lt.u32.totalorder %s1223_s8, %s1378_s2  ;;  %p908_p9 = scmp.lt.u32.totalorder %s906_s17, %s901_s21 }
  0x45   : > { %p904_p0 = pnand %p902_p12, %p873_p8  ;;  %p910_p13 = scmp.lt.u32.totalorder %s901_s21, %s1223_s8 }
  0x46   : > { %p909_p7 = por %p908_p9, %p907_p6 }
  0x47   : > { %p905_p2 = pneg %p904_p0 }
  0x48   : > { %p911_p1 = por %p910_p13, %p909_p7 }
  0x4a   : > { %p912_p4 = pnand %p911_p1, %p905_p2 }
  0x4c   : > { %915 = shalt.err (!%p912_p4)
}
  0x4d   : > { %s916_s24 = scalar_lea.vmem %s1225_s15, 2048  ;;  %s1055_s5 = smov [#allocation7]  }
  0x4e   : > { %p917_p5 = scmp.ne.s32.totalorder %s1225_s15, %s916_s24  ;;  %s921_s7 = sshll.u32 %s1055_s5, 4  ;;  %s922_s7 = int_to_ptr.vmem [resolvable:$false] %s921_s7 }
  0x4f   : > { %s923_s9 = scalar_lea.vmem %s922_s7, 4096  ;;  %p924_p11 = scmp.lt.s32.totalorder %s1225_s15, %s922_s7 }
  0x50   : > { %p919_p12 = pnand %p917_p5, %p873_p8  ;;  %p925_p6 = scmp.lt.s32.totalorder %s923_s9, %s916_s24 }
  0x52   : > { %p920_p0 = pneg %p919_p12  ;;  %p926_p9 = por %p925_p6, %p924_p11 }
  0x54   : > { %p927_p7 = pnand %p926_p9, %p920_p0 }
  0x56   : > { %930 = shalt.err (!%p927_p7)
}
  0x57   : > { %s1056_s21 = smov 128   ;;  %s1057_s23 = smov 8  }
  0x58   : > { %793 = dma.hbm_to_vmem [thread:$0]  (!%p1178_p3), %s1223_s8, 2048, %s1225_s15, %s191_s19, %s1056_s21, %s1056_s21, %s1057_s23  }
  0x59   : > { %213 = sbr.rel (%p1214_p10) target bundleno = 917 (0x395), region = 28  ;;  %s1256_s16 = sand.u32 (!%p1214_p10), 1, %s1035_s26  }
  0x5a   : > { %s1259_s17 = sshll.u32 (!%p1214_p10), %s1256_s16, 3  ;;  %s216_s18 = scalar_lea.sflag (!%p1214_p10), [#allocation5], %s1256_s16 }
  0x5b   : > { %s219_s30 = scalar_lea.vmem (!%p1214_p10), [#allocation4], %s1259_s17  ;;  %p1391_p11 = scmp.ne.s32.totalorder (!%p1214_p10), %s1384_s10, 0 }
  0x60   : > { %1014 = dma.done.wait (%p1391_p11), %s216_s18, 128  }
  0x61   : > { %1016 = vsyncadd (%p1391_p11), %s216_s18, 4294967168  ;;  %s617_s14 = sshll.u32 %s1256_s16, 7  ;;  %s225_s22 = scalar_lea.sflag [#allocation8], %s1256_s16 }
  0x62   : > { %s1269_s20 = scalar_lea.vmem [#allocation7], %s617_s14 }
  0x63   : > { %1018 = dma.done.wait (%p1391_p11), %s225_s22, 2048  }
  0x64   : > { %1020 = vsyncadd (%p1391_p11), %s225_s22, 4294965248  ;;  %v1058_v0 = vmov 0.0|0.0   ;;  %vm1059_vm0 = vmmov 0   ;;  %v1060_v1 = vmov 0.0   ;;  %v263_v2 = vld [vmem:[%s1269_s20] sm:$0xff]  ;;  %v264_v3 = vld [vmem:[%s1269_s20 + $0x8] sm:$0xff]  ;;  %v350_v28 = vlaneseq }
  0x65   : > { %731 = vmatprep.subr.bf16.mxu0 %v1058_v0  ;;  %693 = vmatprep.mubr.msk.f32.mxu0 %vm1059_vm0, %v1060_v1  ;;  %v732_v4 = vpack.c.bf16 %v264_v3, %v263_v2  ;;  %v265_v5 = vld [vmem:[%s1269_s20 + $0x10] sm:$0xff]  ;;  %v266_v6 = vld [vmem:[%s1269_s20 + $0x18] sm:$0xff]  ;;  %v267_v8 = vld [vmem:[%s1269_s20 + $0x20] sm:$0xff]  ;;  %s349_s10 = sld [smem:[#allocation3 + %s1043_s28]]  ;;  %s260_s8 = scalar_lea.vmem [#allocation10], %s1259_s17 }
  0x66   : > { %755 = vmatprep.subr.bf16.mxu1 %v1058_v0  ;;  %728 = vmatprep.mubr.msk.f32.mxu1 %vm1059_vm0, %v1060_v1  ;;  %v735_v7 = vpack.c.bf16 %v266_v6, %v265_v5  ;;  %v268_v9 = vld [vmem:[%s1269_s20 + $0x28] sm:$0xff]  ;;  %v269_v11 = vld [vmem:[%s1269_s20 + $0x30] sm:$0xff]  ;;  %v270_v12 = vld [vmem:[%s1269_s20 + $0x38] sm:$0xff]  ;;  %v351_v29 = vand.u32 127, %v350_v28  ;;  %s622_s15 = sshll.u32 %s1043_s28, 7  ;;  %s470_s7 = sshll.u32 %s260_s8, 4  ;;  %s471_s7 = int_to_ptr.vmem [resolvable:$true] %s470_s7 }
  0x67   : > { %733 = vmatpush3.bf16.xpose.msra.mxu0 %v732_v4  ;;  %757 = vmatpush3.bf16.msra.mxu1 %v732_v4  ;;  %v738_v10 = vpack.c.bf16 %v268_v9, %v267_v8  ;;  %v741_v13 = vpack.c.bf16 %v270_v12, %v269_v11  ;;  %v271_v14 = vld [vmem:[%s1269_s20 + $0x40] sm:$0xff]  ;;  %v272_v15 = vld [vmem:[%s1269_s20 + $0x48] sm:$0xff]  ;;  %v273_v17 = vld [vmem:[%s1269_s20 + $0x50] sm:$0xff]  ;;  %s1301_s5 = scalar_lea.hbm %s1380_s4, %s622_s15  ;;  %s442_s9 = scalar_lea.sflag [#allocation11], %s1256_s16 }
  0x68   : > { %734 = vmatprep.subr.bf16.mxu0 %v1058_v0  ;;  %758 = vmatprep.subr.bf16.mxu1 %v1058_v0  ;;  %v744_v16 = vpack.c.bf16 %v272_v15, %v271_v14  ;;  %v274_v18 = vld [vmem:[%s1269_s20 + $0x58] sm:$0xff]  ;;  %v275_v20 = vld [vmem:[%s1269_s20 + $0x60] sm:$0xff]  ;;  %v276_v21 = vld [vmem:[%s1269_s20 + $0x68] sm:$0xff]  ;;  %s931_s21 = scalar_lea.vmem %s471_s7, 128  ;;  %p1392_p8 = scmp.ne.s32.totalorder %s1385_s11, 0 }
  0x69   : > { %v747_v19 = vpack.c.bf16 %v274_v18, %v273_v17  ;;  %v750_v22 = vpack.c.bf16 %v276_v21, %v275_v20  ;;  %v277_v23 = vld [vmem:[%s1269_s20 + $0x70] sm:$0xff]  ;;  %v278_v24 = vld [vmem:[%s1269_s20 + $0x78] sm:$0xff]  ;;  %p932_p3 = scmp.ne.s32.totalorder %s471_s7, %s931_s21  ;;  %s1061_s23 = smov [#allocation10]  }
  0x6a   : > { %v753_v25 = vpack.c.bf16 %v278_v24, %v277_v23  ;;  %v261_v26 = vld [vmem:[%s219_s30] sm:$0xff]  ;;  %s935_s18 = sshll.u32 %s1061_s23, 4  ;;  %s936_s18 = int_to_ptr.vmem [resolvable:$false] %s935_s18 }
  0x6b   : > { %760 = vmatpush3.bf16.msra.mxu1 %v735_v7  ;;  %v262_v27 = vmul.f32 0.17677669, %v261_v26  ;;  %v352_v30 = vstv %s349_s10  ;;  %p933_p10 = pnand %p932_p3, %p1392_p8  ;;  %s937_s30 = scalar_lea.vmem %s936_s18, 256 }
  0x6c   : > { %761 = vmatprep.subr.bf16.mxu1 %v1058_v0  ;;  %vm353_vm1 = vcmp.lt.s32.totalorder %v351_v29, %v352_v30  ;;  %p938_p13 = scmp.lt.s32.totalorder %s471_s7, %s936_s18  ;;  %p939_p1 = scmp.lt.s32.totalorder %s937_s30, %s931_s21 }
  0x6d   : > { %p934_p2 = pneg %p933_p10 }
  0x6e   : > { %p940_p4 = por %p939_p1, %p938_p13 }
  0x6f   : > { %736 = vmatpush3.bf16.xpose.msra.mxu0 %v735_v7  ;;  %763 = vmatpush3.bf16.msra.mxu1 %v738_v10 }
  0x70   : > { %737 = vmatprep.subr.bf16.mxu0 %v1058_v0  ;;  %764 = vmatprep.subr.bf16.mxu1 %v1058_v0  ;;  %p941_p5 = pnand %p940_p4, %p934_p2 }
  0x73   : > { %766 = vmatpush3.bf16.msra.mxu1 %v741_v13 }
  0x74   : > { %767 = vmatprep.subr.bf16.mxu1 %v1058_v0 }
  0x77   : > { %739 = vmatpush3.bf16.xpose.msra.mxu0 %v738_v10  ;;  %769 = vmatpush3.bf16.msra.mxu1 %v744_v16 }
  0x78   : > { %740 = vmatprep.subr.bf16.mxu0 %v1058_v0  ;;  %770 = vmatprep.subr.bf16.mxu1 %v1058_v0 }
  0x7b   : > { %772 = vmatpush3.bf16.msra.mxu1 %v747_v19 }
  0x7c   : > { %773 = vmatprep.subr.bf16.mxu1 %v1058_v0 }
  0x7f   : > { %742 = vmatpush3.bf16.xpose.msra.mxu0 %v741_v13  ;;  %775 = vmatpush3.bf16.msra.mxu1 %v750_v22 }
  0x80   : > { %743 = vmatprep.subr.bf16.mxu0 %v1058_v0  ;;  %776 = vmatprep.subr.bf16.mxu1 %v1058_v0 }
  0x83   : > { %778 = vmatpush3.bf16.msra.mxu1 %v753_v25 }
  0x87   : > { %745 = vmatpush3.bf16.xpose.msra.mxu0 %v744_v16 }
  0x88   : > { %746 = vmatprep.subr.bf16.mxu0 %v1058_v0 }
  0x8f   : > { %748 = vmatpush3.bf16.xpose.msra.mxu0 %v747_v19 }
  0x90   : > { %749 = vmatprep.subr.bf16.mxu0 %v1058_v0 }
  0x97   : > { %751 = vmatpush3.bf16.xpose.msra.mxu0 %v750_v22 }
  0x98   : > { %752 = vmatprep.subr.bf16.mxu0 %v1058_v0 }
  0x9f   : > { %754 = vmatpush3.bf16.xpose.msra.mxu0 %v753_v25 }
  0xa6   : > { %694 = vmatmul.mubr.f32.vlgmr.msra.gmra.mrb[0].mxu0 %v262_v27 }
 0x179   : > { %v345_v31 = vpop.f32.mrb[0].mxu0 }
 0x17a   : > { %v695_v32 = vpop.f32.mrb[1].mxu0  ;;  %v354_v33 = vsel %vm353_vm1, %v345_v31, -inf }
 0x17b   : > { %355 = vmax.xlane.f32.xlu0 %v354_v33 }
 0x208   : > { %v356_v34 = vpop.xlane.xlu0 %355 }
 0x209   : > { %v357_v35 = vsub.f32 %v354_v33, %v356_v34 }
 0x20b   : > { %v358_v36 = vmul.f32 1.442695, %v357_v35 }
 0x20d   : > { %857 = vpow2.f32 %v358_v36 }
 0x217   : > { %v858_v37 = vpop.eup %857 }
 0x218   : > { %360 = vadd.xlane.f32.xlu0 %v858_v37 }
 0x2a5   : > { %v361_v38 = vpop.xlane.xlu0 %360 }
 0x2a6   : > { %859 = vrcp.f32 %v361_v38 }
 0x2b0   : > { %v860_v39 = vpop.eup %859 }
 0x2b1   : > { %v363_v40 = vmul.f32 %v860_v39, %v858_v37 }
 0x2b3   : > { %729 = vmatmul.mubr.f32.vlgmr.msra.gmra.mrb[0].mxu1 %v363_v40  ;;  %435 = vst [vmem:[%s260_s8] sm:$0xff] %v363_v40 }
 0x2b4   : > { %944 = shalt.err (!%p941_p5)
}
 0x2b5   : > { %s945_s14 = scalar_lea.hbm %s1301_s5, 128  ;;  %s949_s10 = scalar_lea.hbm %s1380_s4, 256 }
 0x2b6   : > { %p946_p12 = scmp.ne.s32.totalorder %s1301_s5, %s945_s14  ;;  %p950_p9 = scmp.lt.u32.totalorder %s1301_s5, %s1380_s4 }
 0x2b7   : > { %p951_p7 = scmp.lt.u32.totalorder %s949_s10, %s945_s14  ;;  %p953_p3 = scmp.lt.u32.totalorder %s945_s14, %s1301_s5 }
 0x2b8   : > { %p947_p0 = pnand %p946_p12, %p1392_p8 }
 0x2b9   : > { %p952_p11 = por %p951_p7, %p950_p9 }
 0x2ba   : > { %p948_p6 = pneg %p947_p0 }
 0x2bb   : > { %p954_p10 = por %p953_p3, %p952_p11 }
 0x2bd   : > { %p955_p2 = pnand %p954_p10, %p948_p6 }
 0x2bf   : > { %958 = shalt.err (!%p955_p2)
}
 0x2c0   : > { %784 = dma.vmem_to_hbm [thread:$0]  (%p1392_p8), %s471_s7, 128, %s1301_s5, %s442_s9  }
 0x2c1   : > { %s253_s24 = scalar_lea.vmem [#allocation9], %s1259_s17  ;;  %s1329_s30 = scalar_lea.hbm %s1379_s3, %s622_s15 }
 0x2c2   : > { %s456_s21 = sshll.u32 %s253_s24, 4  ;;  %s437_s14 = scalar_lea.sflag [#allocation6], %s1256_s16  ;;  %s1322_s21 = int_to_ptr.vmem [resolvable:$true] %s456_s21 }
 0x2c3   : > { %s959_s22 = scalar_lea.vmem %s1322_s21, 128  ;;  %s1062_s17 = smov [#allocation9]  }
 0x2c4   : > { %p960_p13 = scmp.ne.s32.totalorder %s1322_s21, %s959_s22  ;;  %s963_s5 = sshll.u32 %s1062_s17, 4  ;;  %s964_s5 = int_to_ptr.vmem [resolvable:$false] %s963_s5 }
 0x2c5   : > { %s965_s28 = scalar_lea.vmem %s964_s5, 256  ;;  %p966_p5 = scmp.lt.s32.totalorder %s1322_s21, %s964_s5 }
 0x2c6   : > { %p961_p1 = pnand %p960_p13, %p1392_p8  ;;  %p967_p12 = scmp.lt.s32.totalorder %s965_s28, %s959_s22 }
 0x2c8   : > { %p962_p4 = pneg %p961_p1  ;;  %p968_p0 = por %p967_p12, %p966_p5 }
 0x2ca   : > { %p969_p6 = pnand %p968_p0, %p962_p4 }
 0x386   : > { %v430_v41 = vpop.f32.mrb[0].mxu1 }
 0x387   : > { %434 = vst [vmem:[%s253_s24] sm:$0xff] %v430_v41  ;;  %v730_v42 = vpop.f32.mrb[1].mxu1 }
 0x388   : > { %972 = shalt.err (!%p969_p6)
}
 0x389   : > { %s973_s16 = scalar_lea.hbm %s1329_s30, 128  ;;  %s977_s9 = scalar_lea.hbm %s1379_s3, 256 }
 0x38a   : > { %p974_p9 = scmp.ne.s32.totalorder %s1329_s30, %s973_s16  ;;  %p978_p3 = scmp.lt.u32.totalorder %s1329_s30, %s1379_s3 }
 0x38b   : > { %p979_p10 = scmp.lt.u32.totalorder %s977_s9, %s973_s16  ;;  %p981_p13 = scmp.lt.u32.totalorder %s973_s16, %s1329_s30 }
 0x38c   : > { %p975_p7 = pnand %p974_p9, %p1392_p8 }
 0x38d   : > { %p980_p2 = por %p979_p10, %p978_p3 }
 0x38e   : > { %p976_p11 = pneg %p975_p7 }
 0x38f   : > { %p982_p1 = por %p981_p13, %p980_p2 }
 0x391   : > { %p983_p4 = pnand %p982_p1, %p976_p11 }
 0x393   : > { %986 = shalt.err (!%p983_p4)
}
 0x394   : > { %783 = dma.vmem_to_hbm [thread:$0]  (%p1392_p8), %s1322_s21, 128, %s1329_s30, %s437_s14  }
 0x395 PF: > { %s482_s8 = sand.u32 1, %s1031_s25   ;;  %p1393_p5 = scmp.ne.s32.totalorder %s1386_s13, 0 }
 0x396   : > { %p1394_p12 = scmp.ge.s32.totalorder %s1051_s29, 2  ;;  %s483_s19 = scalar_lea.sflag [#allocation6], %s482_s8 }
 0x398   : > { %p795_p0 = pnand %p1394_p12, %p1393_p5 }
 0x39a   : > { %1022 = dma.done.wait (!%p795_p0), %s483_s19, 128  }
 0x39b   : > { %1024 = vsyncadd (!%p795_p0), %s483_s19, 4294967168  ;;  %s492_s24 = scalar_lea.sflag [#allocation11], %s482_s8 }
 0x39c   : > { %1026 = dma.done.wait (!%p795_p0), %s492_s24, 128  }
 0x39d   : > { %1028 = vsyncadd (!%p795_p0), %s492_s24, 4294967168  ;;  %s31_s29 = sadd.s32 1, %s1051_s29   ;;  %s1395_s25 = smov %s1035_s26 }
 0x39e   : > { %p28_p6 = scmp.ge.s32.totalorder %s31_s29, 4   ;;  %s1396_s26 = smov %s1039_s27 }
 0x39f   : > { %s1397_s27 = smov %s1156_s12  ;;  %s1398_s28 = smov %s1047_s0 }
 0x3a0   : > { %s1399_s0 = smov %s1401_s6  ;;  %30 = sbr.rel (!%p28_p6) target bundleno = 22 (0x16), region = 103 }
 0x3a7   :  { %497 = vsyncpa [#allocation5], 1 }
 0x3a8   :  { %499 = vsyncpa [#allocation5 + $0x1], 1 }
 0x3a9   :  { %500 = vsyncpa [#allocation8], 1 }
 0x3aa   :  { %502 = vsyncpa [#allocation8 + $0x1], 1 }
 0x3ab   :  { %503 = vsyncpa [#allocation6], 1 }
 0x3ac   :  { %505 = vsyncpa [#allocation6 + $0x1], 1 }
 0x3ad   :  { %506 = vsyncpa [#allocation11], 1 }
 0x3ae   :  { %508 = vsyncpa [#allocation11 + $0x1], 1 }

</bundles_post_ra>
